<compile_context>
chip_gen: v5e
topology: v5e:2x2
jax: 0.10.0
libtpu: 0.0.40
codegen_flags: <defaults>
</compile_context>

<pallas_src>
import functools
import math

import jax
import jax.numpy as jnp
from jax.experimental import pallas as pl
from jax.experimental.pallas import tpu as pltpu

_NEG_INF = -1e30
_LN_EPS = 1e-5            # nn.LayerNorm default


def _layernorm(h, w, b):
    mu = jnp.mean(h, axis=-1, keepdims=True)
    var = jnp.mean((h - mu) ** 2, axis=-1, keepdims=True)   # biased, like PyTorch
    return (h - mu) * jax.lax.rsqrt(var + _LN_EPS) * w + b


# --------------------------------------------------------------------------
# Kernel A: LayerNorm1 + QKV projection, head-major outputs (K pre-transposed).
# --------------------------------------------------------------------------
def ln_qkv_kernel(x_ref, ln1_w_ref, ln1_b_ref, w_qkv_ref, b_qkv_ref,
                  q_ref, k_ref, v_ref, *, n_head, scale):
    x = x_ref[...]                                   # (tq, C) f32
    C = x.shape[-1]
    hd = C // n_head
    h = _layernorm(x, ln1_w_ref[0], ln1_b_ref[0])
    qkv = jnp.dot(h.astype(jnp.bfloat16), w_qkv_ref[...],
                  preferred_element_type=jnp.float32) + b_qkv_ref[0]
    # Head relayout happens once here (per tile), not per kv step in Kernel B.
    for hh in range(n_head):
        s0 = hh * hd
        q_ref[hh] = (qkv[:, s0:s0 + hd] * scale).astype(q_ref.dtype)       # (tq, hd)
        k_ref[hh] = qkv[:, C + s0:C + s0 + hd].T.astype(k_ref.dtype)       # (hd, tq)
        v_ref[hh] = qkv[:, 2 * C + s0:2 * C + s0 + hd].astype(v_ref.dtype)  # (tq, hd)


# --------------------------------------------------------------------------
# Kernel B: flash attention + output proj + residual + LN2 + MLP + residual.
# Grid = (B, num_q_tiles, num_kv_tiles); kv axis is the innermost "arbitrary"
# reduction axis, with head-major online-softmax state held in VMEM scratch.
# --------------------------------------------------------------------------
def attn_mlp_kernel(x_ref, q_ref, kT_ref, v_ref,
                    w_ao_ref, b_ao_ref, ln2_w_ref, ln2_b_ref,
                    w_fc_ref, b_fc_ref, w_mo_ref, b_mo_ref,
                    o_ref,
                    m_sc, l_sc, acc_sc,
                    *, n_head):
    qi = pl.program_id(1)
    ki = pl.program_id(2)
    nk = pl.num_programs(2)
    C = x_ref.shape[-1]
    tq = q_ref.shape[1]
    tk = v_ref.shape[1]

    @pl.when(ki == 0)
    def _init():
        m_sc[...] = jnp.full(m_sc.shape, _NEG_INF, jnp.float32)
        l_sc[...] = jnp.zeros(l_sc.shape, jnp.float32)
        acc_sc[...] = jnp.zeros(acc_sc.shape, jnp.float32)

    def _attn_step(masked):
        if masked:
            # Diagonal tile: local causal mask (tq == tk, same tile offset).
            row = jax.lax.broadcasted_iota(jnp.int32, (tq, tk), 0)
            col = jax.lax.broadcasted_iota(jnp.int32, (tq, tk), 1)
            add_mask = jnp.where(row >= col, 0.0, _NEG_INF).astype(jnp.float32)
        for h in range(n_head):
            # Whole-tile, leading-axis loads: no lane-misaligned slicing.
            s = jnp.dot(q_ref[h], kT_ref[h],            # (tq,hd)@(hd,tk), q pre-scaled
                        preferred_element_type=jnp.float32)
            if masked:
                s = s + add_mask
            m_prev = m_sc[h]                                        # (tq, 1)
            m_new = jnp.maximum(m_prev, jnp.max(s, axis=-1, keepdims=True))
            alpha = jnp.exp(m_prev - m_new)
            p = jnp.exp(s - m_new)
            l_sc[h] = alpha * l_sc[h] + jnp.sum(p, axis=-1, keepdims=True)
            acc_sc[h] = alpha * acc_sc[h] + jnp.dot(
                p.astype(jnp.bfloat16), v_ref[h],
                preferred_element_type=jnp.float32)
            m_sc[h] = m_new

    # Interior tiles (fully below the diagonal): unmasked fast path.
    @pl.when(ki < qi)
    def _interior():
        _attn_step(masked=False)

    # Diagonal tile: masked path. Tiles with ki > qi are skipped entirely
    # (and their K/V DMAs are suppressed by the clamped index maps).
    @pl.when(ki == qi)
    def _diag():
        _attn_step(masked=True)

    @pl.when(ki == nk - 1)
    def _finalize():
        # Output projection as a per-head matmul-sum against w_ao reshaped to
        # (n_head, hd, C): no head relayout / transpose of the accumulator.
        y = jnp.zeros((tq, C), jnp.float32)
        for h in range(n_head):
            ph = acc_sc[h] * pl.reciprocal(l_sc[h], approx=True)    # (tq, hd)
            y = y + jnp.dot(ph.astype(jnp.bfloat16), w_ao_ref[h],
                            preferred_element_type=jnp.float32)
        y = y + b_ao_ref[0]
        x1 = x_ref[...] + y                                         # first residual

        h2 = _layernorm(x1, ln2_w_ref[0], ln2_b_ref[0])
        u = jnp.dot(h2.astype(jnp.bfloat16), w_fc_ref[...],
                    preferred_element_type=jnp.float32) + b_fc_ref[0]
        c = math.sqrt(2.0 / math.pi)                                # GELU(tanh)
        u = 0.5 * u * (1.0 + jnp.tanh(c * (u + 0.044715 * (u * u * u))))
        mo = jnp.dot(u.astype(jnp.bfloat16), w_mo_ref[...],
                     preferred_element_type=jnp.float32) + b_mo_ref[0]
        o_ref[...] = (x1 + mo).astype(o_ref.dtype)                  # second residual


# --------------------------------------------------------------------------
# Wrapper
# --------------------------------------------------------------------------
def _vmem_limit_bytes():
    # Generation-aware VMEM budget: ~75% of physical (v5e/v6e: 128 MiB,
    # v7x: 64 MiB per TC), capped at 100 MiB.
    try:
        cap = pltpu.get_tpu_info().vmem_capacity_bytes
        return max(32 * 1024 * 1024, min((int(cap) * 3) // 4, 100 * 1024 * 1024))
    except Exception:
        return 64 * 1024 * 1024


def gpt2_block(x, params, n_head):
    B, T, C = x.shape
    assert C % n_head == 0
    hd = C // n_head
    # tq == tk so only the diagonal tile needs a mask; 256 fills the 256-wide
    # MXU on v6e/v7x and keeps attention above the HBM roofline.
    if T % 256 == 0:
        tq = 256
    elif T % 128 == 0:
        tq = 128
    else:
        tq = T
    tk = tq
    nq, nk = T // tq, T // tk
    bf16 = jnp.bfloat16
    scale = 1.0 / math.sqrt(hd)

    # bf16 weights for the MXU; biases / LayerNorm params stay f32.
    w_qkv = params['w_qkv'].astype(bf16)
    w_ao = params['w_ao'].astype(bf16).reshape(n_head, hd, C)   # head-major in-dim
    w_fc = params['w_fc'].astype(bf16)
    w_mo = params['w_mo'].astype(bf16)

    vmem_limit = _vmem_limit_bytes()

    # ---- Kernel A: LayerNorm1 + QKV projection -> head-major q, kT, v ----
    cost_a = pl.CostEstimate(
        flops=2 * B * T * C * 3 * C + 10 * B * T * C,
        transcendentals=B * T,
        bytes_accessed=B * T * C * 4 + 3 * C * C * 2 + 3 * B * T * C * 2)
    kernel_a = functools.partial(ln_qkv_kernel, n_head=n_head, scale=scale)
    q, k, v = pl.pallas_call(
        kernel_a,
        grid=(B, nq),
        in_specs=[
            pl.BlockSpec((None, tq, C), lambda b, i: (b, i, 0)),     # x
            pl.BlockSpec((1, C), lambda b, i: (0, 0)),               # ln1_w
            pl.BlockSpec((1, C), lambda b, i: (0, 0)),               # ln1_b
            pl.BlockSpec((C, 3 * C), lambda b, i: (0, 0)),           # w_qkv (bf16)
            pl.BlockSpec((1, 3 * C), lambda b, i: (0, 0)),           # b_qkv
        ],
        out_specs=[
            pl.BlockSpec((None, n_head, tq, hd), lambda b, i: (b, 0, i, 0)),  # q
            pl.BlockSpec((None, n_head, hd, tq), lambda b, i: (b, 0, 0, i)),  # kT
            pl.BlockSpec((None, n_head, tq, hd), lambda b, i: (b, 0, i, 0)),  # v
        ],
        out_shape=[
            jax.ShapeDtypeStruct((B, n_head, T, hd), bf16),
            jax.ShapeDtypeStruct((B, n_head, hd, T), bf16),
            jax.ShapeDtypeStruct((B, n_head, T, hd), bf16),
        ],
        compiler_params=pltpu.CompilerParams(
            dimension_semantics=("parallel", "parallel"),
            vmem_limit_bytes=vmem_limit),
        cost_estimate=cost_a,
    )(x, params['ln1_w'], params['ln1_b'], w_qkv, params['b_qkv'])

    # ---- Kernel B: flash attention + proj + residuals + LN2 + MLP ----
    cost_b = pl.CostEstimate(
        flops=2 * B * T * T * C + 2 * B * T * C * C + 16 * B * T * C * C,
        transcendentals=B * n_head * T * T // 2 + 4 * B * T * C,
        bytes_accessed=(2 * B * T * C * 4                      # x in + out
                        + B * T * C * 2                        # q
                        + (nq + 1) * B * T * C * 2             # K/V re-read (causal)
                        + 9 * C * C * 2))                      # weights
    kernel_b = functools.partial(attn_mlp_kernel, n_head=n_head)
    # K/V index maps clamped to the diagonal: above-diagonal steps re-use the
    # resident block, so no HBM DMA is issued for causally-skipped tiles.
    out = pl.pallas_call(
        kernel_b,
        grid=(B, nq, nk),
        in_specs=[
            pl.BlockSpec((None, tq, C), lambda b, qi, ki: (b, qi, 0)),        # x (residual)
            pl.BlockSpec((None, n_head, tq, hd),
                         lambda b, qi, ki: (b, 0, qi, 0)),                    # q
            pl.BlockSpec((None, n_head, hd, tk),
                         lambda b, qi, ki: (b, 0, 0, jnp.minimum(ki, qi))),   # kT
            pl.BlockSpec((None, n_head, tk, hd),
                         lambda b, qi, ki: (b, 0, jnp.minimum(ki, qi), 0)),   # v
            pl.BlockSpec((n_head, hd, C), lambda b, qi, ki: (0, 0, 0)),       # w_ao (bf16)
            pl.BlockSpec((1, C), lambda b, qi, ki: (0, 0)),                   # b_ao
            pl.BlockSpec((1, C), lambda b, qi, ki: (0, 0)),                   # ln2_w
            pl.BlockSpec((1, C), lambda b, qi, ki: (0, 0)),                   # ln2_b
            pl.BlockSpec((C, 4 * C), lambda b, qi, ki: (0, 0)),               # w_fc (bf16)
            pl.BlockSpec((1, 4 * C), lambda b, qi, ki: (0, 0)),               # b_fc
            pl.BlockSpec((4 * C, C), lambda b, qi, ki: (0, 0)),               # w_mo (bf16)
            pl.BlockSpec((1, C), lambda b, qi, ki: (0, 0)),                   # b_mo
        ],
        out_specs=pl.BlockSpec((None, tq, C), lambda b, qi, ki: (b, qi, 0)),
        out_shape=jax.ShapeDtypeStruct((B, T, C), x.dtype),
        scratch_shapes=[
            pltpu.VMEM((n_head, tq, 1), jnp.float32),    # running max m
            pltpu.VMEM((n_head, tq, 1), jnp.float32),    # running denom l
            pltpu.VMEM((n_head, tq, hd), jnp.float32),   # head-major attn accumulator
        ],
        compiler_params=pltpu.CompilerParams(
            dimension_semantics=("parallel", "parallel", "arbitrary"),
            vmem_limit_bytes=vmem_limit),
        cost_estimate=cost_b,
    )(x, q, k, v,
      w_ao, params['b_ao'], params['ln2_w'], params['ln2_b'],
      w_fc, params['b_fc'], w_mo, params['b_mo'])
    # TODO(synk): single-buffer grid-invariant weight blocks (pipeline_mode=
    #   pl.Buffered(1)) and, at GPT-2 medium+ sizes on v7x, stream w_fc/w_mo
    #   over a hidden-dim grid axis (memory_space=pl.ANY + emit_pipeline) or
    #   split the epilogue into a separate pallas_call.
    # TODO(synk): for very long T, flatten the causal (qi,ki) pairs into a 1-D
    #   grid driven by scalar-prefetched index tables (PrefetchScalarGridSpec)
    #   to remove the ~0.35us overhead of above-diagonal grid steps.
    return out


# --------------------------------------------------------------------------
# Pure-JAX reference (PyTorch semantics) for the sanity check.
# --------------------------------------------------------------------------
def reference_block(x, params, n_head):
    B, T, C = x.shape
    hd = C // n_head

    def ln(h, w, b):
        mu = jnp.mean(h, axis=-1, keepdims=True)
        var = jnp.mean((h - mu) ** 2, axis=-1, keepdims=True)
        return (h - mu) * jax.lax.rsqrt(var + _LN_EPS) * w[0] + b[0]

    h = ln(x, params['ln1_w'], params['ln1_b'])
    qkv = h @ params['w_qkv'] + params['b_qkv'][0]
    q, k, v = jnp.split(qkv, 3, axis=-1)
    q = q.reshape(B, T, n_head, hd).transpose(0, 2, 1, 3)
    k = k.reshape(B, T, n_head, hd).transpose(0, 2, 1, 3)
    v = v.reshape(B, T, n_head, hd).transpose(0, 2, 1, 3)
    att = jnp.einsum('bhtd,bhsd->bhts', q, k) / math.sqrt(hd)
    mask = jnp.tril(jnp.ones((T, T), bool))
    att = jnp.where(mask, att, -jnp.inf)
    p = jax.nn.softmax(att, axis=-1)
    y = jnp.einsum('bhts,bhsd->bhtd', p, v).transpose(0, 2, 1, 3).reshape(B, T, C)
    y = y @ params['w_ao'] + params['b_ao'][0]
    x1 = x + y
    h2 = ln(x1, params['ln2_w'], params['ln2_b'])
    u = h2 @ params['w_fc'] + params['b_fc'][0]
    c = math.sqrt(2.0 / math.pi)
    u = 0.5 * u * (1.0 + jnp.tanh(c * (u + 0.044715 * u ** 3)))
    return x1 + u @ params['w_mo'] + params['b_mo'][0]


if __name__ == "__main__":
    B, T, C, n_head = 2, 8, 32, 4

    key = jax.random.PRNGKey(0)
    keys = jax.random.split(key, 9)

    def nrm(k, shape, scale=0.02):
        return (scale * jax.random.normal(k, shape)).astype(jnp.float32)

    params = {
        # nn.LayerNorm default init: weight=1, bias=0
        'ln1_w': jnp.ones((1, C), jnp.float32),
        'ln1_b': jnp.zeros((1, C), jnp.float32),
        # attention linears (already in (in, out) layout)
        'w_qkv': nrm(keys[0], (C, 3 * C)),
        'b_qkv': nrm(keys[1], (1, 3 * C)),
        'w_ao': nrm(keys[2], (C, C)),
        'b_ao': nrm(keys[3], (1, C)),
        'ln2_w': jnp.ones((1, C), jnp.float32),
        'ln2_b': jnp.zeros((1, C), jnp.float32),
        # MLP linears
        'w_fc': nrm(keys[4], (C, 4 * C)),
        'b_fc': nrm(keys[5], (1, 4 * C)),
        'w_mo': nrm(keys[6], (4 * C, C)),
        'b_mo': nrm(keys[7], (1, C)),
    }

    x = jax.random.normal(keys[8], (B, T, C), jnp.float32)

    out = gpt2_block(x, params, n_head)
    out = jax.block_until_ready(out)

    ref = reference_block(x, params, n_head)
    assert out.shape == (B, T, C)
    # bf16 matmul operands + approx reciprocal -> compare at a relaxed tolerance.
    assert jnp.allclose(out, ref, rtol=2e-2, atol=2e-2), "mismatch vs pure-JAX reference"

    print("KERNEL_OK")
</pallas_src>

<mosaic_0001>
module attributes {stable_mosaic.version = 11 : i64} {
  func.func @ln_qkv_kernel(%arg0: i32, %arg1: i32, %arg2: memref<1x8x32xf32, #tpu.memory_space<vmem>>, %arg3: memref<1x32xf32, #tpu.memory_space<vmem>>, %arg4: memref<1x32xf32, #tpu.memory_space<vmem>>, %arg5: memref<32x96xbf16, #tpu.memory_space<vmem>>, %arg6: memref<1x96xf32, #tpu.memory_space<vmem>>, %arg7: memref<1x4x8x8xbf16, #tpu.memory_space<vmem>>, %arg8: memref<1x4x8x8xbf16, #tpu.memory_space<vmem>>, %arg9: memref<1x4x8x8xbf16, #tpu.memory_space<vmem>>) attributes {dimension_semantics = [#tpu.dimension_semantics<parallel>, #tpu.dimension_semantics<parallel>], iteration_bounds = array<i64: 2, 1>, scalar_prefetch = 0 : i64, scratch_operands = 0 : i64, tpu.core_type = #tpu.core_type<tc>, window_params = [{transform_indices = @transform_0, window_bounds = array<i64: 1, 8, 32>}, {pipeline_mode = #tpu.pipeline_mode<synchronous>, transform_indices = @transform_1, window_bounds = array<i64: 1, 32>}, {pipeline_mode = #tpu.pipeline_mode<synchronous>, transform_indices = @transform_2, window_bounds = array<i64: 1, 32>}, {pipeline_mode = #tpu.pipeline_mode<synchronous>, transform_indices = @transform_3, window_bounds = array<i64: 32, 96>}, {pipeline_mode = #tpu.pipeline_mode<synchronous>, transform_indices = @transform_4, window_bounds = array<i64: 1, 96>}, {transform_indices = @transform_5, window_bounds = array<i64: 1, 4, 8, 8>}, {transform_indices = @transform_6, window_bounds = array<i64: 1, 4, 8, 8>}, {transform_indices = @transform_7, window_bounds = array<i64: 1, 4, 8, 8>}]} {
    %c0 = arith.constant 0 : index
    %c0_0 = arith.constant 0 : index
    %c0_1 = arith.constant 0 : index
    %0 = vector.load %arg2[%c0, %c0_0, %c0_1] : memref<1x8x32xf32, #tpu.memory_space<vmem>>, vector<1x8x32xf32>
    %1 = vector.shape_cast %0 : vector<1x8x32xf32> to vector<8x32xf32>
    %c0_2 = arith.constant 0 : index
    %c0_3 = arith.constant 0 : index
    %2 = vector.load %arg3[%c0_2, %c0_3] : memref<1x32xf32, #tpu.memory_space<vmem>>, vector<1x32xf32>
    %3 = vector.shape_cast %2 : vector<1x32xf32> to vector<32xf32>
    %c0_4 = arith.constant 0 : index
    %c0_5 = arith.constant 0 : index
    %4 = vector.load %arg4[%c0_4, %c0_5] : memref<1x32xf32, #tpu.memory_space<vmem>>, vector<1x32xf32>
    %5 = vector.shape_cast %4 : vector<1x32xf32> to vector<32xf32>
    %cst = arith.constant dense<0.000000e+00> : vector<8xf32>
    %6 = vector.multi_reduction <add>, %1, %cst [1] : vector<8x32xf32> to vector<8xf32>
    %7 = vector.shape_cast %6 : vector<8xf32> to vector<8x1xf32>
    %cst_6 = arith.constant 3.200000e+01 : f32
    %8 = vector.broadcast %cst_6 : f32 to vector<8x1xf32>
    %9 = arith.divf %7, %8 : vector<8x1xf32>
    %10 = vector.broadcast %9 : vector<8x1xf32> to vector<8x32xf32>
    %11 = arith.subf %1, %10 : vector<8x32xf32>
    %12 = arith.mulf %11, %11 : vector<8x32xf32>
    %cst_7 = arith.constant dense<0.000000e+00> : vector<8xf32>
    %13 = vector.multi_reduction <add>, %12, %cst_7 [1] : vector<8x32xf32> to vector<8xf32>
    %14 = vector.shape_cast %13 : vector<8xf32> to vector<8x1xf32>
    %cst_8 = arith.constant 3.200000e+01 : f32
    %15 = vector.broadcast %cst_8 : f32 to vector<8x1xf32>
    %16 = arith.divf %14, %15 : vector<8x1xf32>
    %17 = vector.broadcast %9 : vector<8x1xf32> to vector<8x32xf32>
    %18 = arith.subf %1, %17 : vector<8x32xf32>
    %cst_9 = arith.constant 9.99999974E-6 : f32
    %19 = vector.broadcast %cst_9 : f32 to vector<8x1xf32>
    %20 = arith.addf %16, %19 : vector<8x1xf32>
    %21 = math.rsqrt %20 : vector<8x1xf32>
    %22 = vector.broadcast %21 : vector<8x1xf32> to vector<8x32xf32>
    %23 = arith.mulf %18, %22 : vector<8x32xf32>
    %24 = vector.shape_cast %3 : vector<32xf32> to vector<1x32xf32>
    %25 = vector.broadcast %24 : vector<1x32xf32> to vector<8x32xf32>
    %26 = arith.mulf %23, %25 : vector<8x32xf32>
    %27 = vector.shape_cast %5 : vector<32xf32> to vector<1x32xf32>
    %28 = vector.broadcast %27 : vector<1x32xf32> to vector<8x32xf32>
    %29 = arith.addf %26, %28 : vector<8x32xf32>
    %30 = arith.truncf %29 : vector<8x32xf32> to vector<8x32xbf16>
    %c0_10 = arith.constant 0 : index
    %c0_11 = arith.constant 0 : index
    %31 = vector.load %arg5[%c0_10, %c0_11] : memref<32x96xbf16, #tpu.memory_space<vmem>>, vector<32x96xbf16>
    %cst_12 = arith.constant dense<0.000000e+00> : vector<8x96xf32>
    %32 = tpu.matmul %30, %31, %cst_12 {dimension_numbers = #tpu.dot_dimension_numbers<[1], [0], [0], [1], [0, 0, 1, 1], [], []>} : vector<8x32xbf16>, vector<32x96xbf16>, vector<8x96xf32> -> vector<8x96xf32>
    %c0_13 = arith.constant 0 : index
    %c0_14 = arith.constant 0 : index
    %33 = vector.load %arg6[%c0_13, %c0_14] : memref<1x96xf32, #tpu.memory_space<vmem>>, vector<1x96xf32>
    %34 = vector.shape_cast %33 : vector<1x96xf32> to vector<96xf32>
    %35 = vector.shape_cast %34 : vector<96xf32> to vector<1x96xf32>
    %36 = vector.broadcast %35 : vector<1x96xf32> to vector<8x96xf32>
    %37 = arith.addf %32, %36 : vector<8x96xf32>
    %38 = vector.extract_strided_slice %37 {offsets = [0, 0], sizes = [8, 8], strides = [1, 1]} : vector<8x96xf32> to vector<8x8xf32>
    %cst_15 = arith.constant 0.353553385 : f32
    %39 = vector.broadcast %cst_15 : f32 to vector<8x8xf32>
    %40 = arith.mulf %38, %39 : vector<8x8xf32>
    %41 = arith.truncf %40 : vector<8x8xf32> to vector<8x8xbf16>
    %c0_16 = arith.constant 0 : index
    %c0_17 = arith.constant 0 : index
    %c0_18 = arith.constant 0 : index
    %c0_19 = arith.constant 0 : index
    %42 = vector.load %arg7[%c0_16, %c0_17, %c0_18, %c0_19] : memref<1x4x8x8xbf16, #tpu.memory_space<vmem>>, vector<1x1x8x8xbf16>
    %43 = vector.shape_cast %42 : vector<1x1x8x8xbf16> to vector<8x8xbf16>
    %44 = vector.shape_cast %41 : vector<8x8xbf16> to vector<1x1x8x8xbf16>
    tpu.vector_store %arg7[%c0_16, %c0_17, %c0_18, %c0_19], %44 {strides = array<i32>} : memref<1x4x8x8xbf16, #tpu.memory_space<vmem>>, vector<1x1x8x8xbf16>,
    %45 = vector.extract_strided_slice %37 {offsets = [0, 32], sizes = [8, 8], strides = [1, 1]} : vector<8x96xf32> to vector<8x8xf32>
    %46 = tpu.transpose %45, [1, 0] : vector<8x8xf32> -> vector<8x8xf32>
    %47 = arith.truncf %46 : vector<8x8xf32> to vector<8x8xbf16>
    %c0_20 = arith.constant 0 : index
    %c0_21 = arith.constant 0 : index
    %c0_22 = arith.constant 0 : index
    %c0_23 = arith.constant 0 : index
    %48 = vector.load %arg8[%c0_20, %c0_21, %c0_22, %c0_23] : memref<1x4x8x8xbf16, #tpu.memory_space<vmem>>, vector<1x1x8x8xbf16>
    %49 = vector.shape_cast %48 : vector<1x1x8x8xbf16> to vector<8x8xbf16>
    %50 = vector.shape_cast %47 : vector<8x8xbf16> to vector<1x1x8x8xbf16>
    tpu.vector_store %arg8[%c0_20, %c0_21, %c0_22, %c0_23], %50 {strides = array<i32>} : memref<1x4x8x8xbf16, #tpu.memory_space<vmem>>, vector<1x1x8x8xbf16>,
    %51 = vector.extract_strided_slice %37 {offsets = [0, 64], sizes = [8, 8], strides = [1, 1]} : vector<8x96xf32> to vector<8x8xf32>
    %52 = arith.truncf %51 : vector<8x8xf32> to vector<8x8xbf16>
    %c0_24 = arith.constant 0 : index
    %c0_25 = arith.constant 0 : index
    %c0_26 = arith.constant 0 : index
    %c0_27 = arith.constant 0 : index
    %53 = vector.load %arg9[%c0_24, %c0_25, %c0_26, %c0_27] : memref<1x4x8x8xbf16, #tpu.memory_space<vmem>>, vector<1x1x8x8xbf16>
    %54 = vector.shape_cast %53 : vector<1x1x8x8xbf16> to vector<8x8xbf16>
    %55 = vector.shape_cast %52 : vector<8x8xbf16> to vector<1x1x8x8xbf16>
    tpu.vector_store %arg9[%c0_24, %c0_25, %c0_26, %c0_27], %55 {strides = array<i32>} : memref<1x4x8x8xbf16, #tpu.memory_space<vmem>>, vector<1x1x8x8xbf16>,
    %56 = vector.extract_strided_slice %37 {offsets = [0, 8], sizes = [8, 8], strides = [1, 1]} : vector<8x96xf32> to vector<8x8xf32>
    %cst_28 = arith.constant 0.353553385 : f32
    %57 = vector.broadcast %cst_28 : f32 to vector<8x8xf32>
    %58 = arith.mulf %56, %57 : vector<8x8xf32>
    %59 = arith.truncf %58 : vector<8x8xf32> to vector<8x8xbf16>
    %c0_29 = arith.constant 0 : index
    %c1 = arith.constant 1 : index
    %c0_30 = arith.constant 0 : index
    %c0_31 = arith.constant 0 : index
    %60 = vector.load %arg7[%c0_29, %c1, %c0_30, %c0_31] : memref<1x4x8x8xbf16, #tpu.memory_space<vmem>>, vector<1x1x8x8xbf16>
    %61 = vector.shape_cast %60 : vector<1x1x8x8xbf16> to vector<8x8xbf16>
    %62 = vector.shape_cast %59 : vector<8x8xbf16> to vector<1x1x8x8xbf16>
    tpu.vector_store %arg7[%c0_29, %c1, %c0_30, %c0_31], %62 {strides = array<i32>} : memref<1x4x8x8xbf16, #tpu.memory_space<vmem>>, vector<1x1x8x8xbf16>,
    %63 = vector.extract_strided_slice %37 {offsets = [0, 40], sizes = [8, 8], strides = [1, 1]} : vector<8x96xf32> to vector<8x8xf32>
    %64 = tpu.transpose %63, [1, 0] : vector<8x8xf32> -> vector<8x8xf32>
    %65 = arith.truncf %64 : vector<8x8xf32> to vector<8x8xbf16>
    %c0_32 = arith.constant 0 : index
    %c1_33 = arith.constant 1 : index
    %c0_34 = arith.constant 0 : index
    %c0_35 = arith.constant 0 : index
    %66 = vector.load %arg8[%c0_32, %c1_33, %c0_34, %c0_35] : memref<1x4x8x8xbf16, #tpu.memory_space<vmem>>, vector<1x1x8x8xbf16>
    %67 = vector.shape_cast %66 : vector<1x1x8x8xbf16> to vector<8x8xbf16>
    %68 = vector.shape_cast %65 : vector<8x8xbf16> to vector<1x1x8x8xbf16>
    tpu.vector_store %arg8[%c0_32, %c1_33, %c0_34, %c0_35], %68 {strides = array<i32>} : memref<1x4x8x8xbf16, #tpu.memory_space<vmem>>, vector<1x1x8x8xbf16>,
    %69 = vector.extract_strided_slice %37 {offsets = [0, 72], sizes = [8, 8], strides = [1, 1]} : vector<8x96xf32> to vector<8x8xf32>
    %70 = arith.truncf %69 : vector<8x8xf32> to vector<8x8xbf16>
    %c0_36 = arith.constant 0 : index
    %c1_37 = arith.constant 1 : index
    %c0_38 = arith.constant 0 : index
    %c0_39 = arith.constant 0 : index
    %71 = vector.load %arg9[%c0_36, %c1_37, %c0_38, %c0_39] : memref<1x4x8x8xbf16, #tpu.memory_space<vmem>>, vector<1x1x8x8xbf16>
    %72 = vector.shape_cast %71 : vector<1x1x8x8xbf16> to vector<8x8xbf16>
    %73 = vector.shape_cast %70 : vector<8x8xbf16> to vector<1x1x8x8xbf16>
    tpu.vector_store %arg9[%c0_36, %c1_37, %c0_38, %c0_39], %73 {strides = array<i32>} : memref<1x4x8x8xbf16, #tpu.memory_space<vmem>>, vector<1x1x8x8xbf16>,
    %74 = vector.extract_strided_slice %37 {offsets = [0, 16], sizes = [8, 8], strides = [1, 1]} : vector<8x96xf32> to vector<8x8xf32>
    %cst_40 = arith.constant 0.353553385 : f32
    %75 = vector.broadcast %cst_40 : f32 to vector<8x8xf32>
    %76 = arith.mulf %74, %75 : vector<8x8xf32>
    %77 = arith.truncf %76 : vector<8x8xf32> to vector<8x8xbf16>
    %c0_41 = arith.constant 0 : index
    %c2 = arith.constant 2 : index
    %c0_42 = arith.constant 0 : index
    %c0_43 = arith.constant 0 : index
    %78 = vector.load %arg7[%c0_41, %c2, %c0_42, %c0_43] : memref<1x4x8x8xbf16, #tpu.memory_space<vmem>>, vector<1x1x8x8xbf16>
    %79 = vector.shape_cast %78 : vector<1x1x8x8xbf16> to vector<8x8xbf16>
    %80 = vector.shape_cast %77 : vector<8x8xbf16> to vector<1x1x8x8xbf16>
    tpu.vector_store %arg7[%c0_41, %c2, %c0_42, %c0_43], %80 {strides = array<i32>} : memref<1x4x8x8xbf16, #tpu.memory_space<vmem>>, vector<1x1x8x8xbf16>,
    %81 = vector.extract_strided_slice %37 {offsets = [0, 48], sizes = [8, 8], strides = [1, 1]} : vector<8x96xf32> to vector<8x8xf32>
    %82 = tpu.transpose %81, [1, 0] : vector<8x8xf32> -> vector<8x8xf32>
    %83 = arith.truncf %82 : vector<8x8xf32> to vector<8x8xbf16>
    %c0_44 = arith.constant 0 : index
    %c2_45 = arith.constant 2 : index
    %c0_46 = arith.constant 0 : index
    %c0_47 = arith.constant 0 : index
    %84 = vector.load %arg8[%c0_44, %c2_45, %c0_46, %c0_47] : memref<1x4x8x8xbf16, #tpu.memory_space<vmem>>, vector<1x1x8x8xbf16>
    %85 = vector.shape_cast %84 : vector<1x1x8x8xbf16> to vector<8x8xbf16>
    %86 = vector.shape_cast %83 : vector<8x8xbf16> to vector<1x1x8x8xbf16>
    tpu.vector_store %arg8[%c0_44, %c2_45, %c0_46, %c0_47], %86 {strides = array<i32>} : memref<1x4x8x8xbf16, #tpu.memory_space<vmem>>, vector<1x1x8x8xbf16>,
    %87 = vector.extract_strided_slice %37 {offsets = [0, 80], sizes = [8, 8], strides = [1, 1]} : vector<8x96xf32> to vector<8x8xf32>
    %88 = arith.truncf %87 : vector<8x8xf32> to vector<8x8xbf16>
    %c0_48 = arith.constant 0 : index
    %c2_49 = arith.constant 2 : index
    %c0_50 = arith.constant 0 : index
    %c0_51 = arith.constant 0 : index
    %89 = vector.load %arg9[%c0_48, %c2_49, %c0_50, %c0_51] : memref<1x4x8x8xbf16, #tpu.memory_space<vmem>>, vector<1x1x8x8xbf16>
    %90 = vector.shape_cast %89 : vector<1x1x8x8xbf16> to vector<8x8xbf16>
    %91 = vector.shape_cast %88 : vector<8x8xbf16> to vector<1x1x8x8xbf16>
    tpu.vector_store %arg9[%c0_48, %c2_49, %c0_50, %c0_51], %91 {strides = array<i32>} : memref<1x4x8x8xbf16, #tpu.memory_space<vmem>>, vector<1x1x8x8xbf16>,
    %92 = vector.extract_strided_slice %37 {offsets = [0, 24], sizes = [8, 8], strides = [1, 1]} : vector<8x96xf32> to vector<8x8xf32>
    %cst_52 = arith.constant 0.353553385 : f32
    %93 = vector.broadcast %cst_52 : f32 to vector<8x8xf32>
    %94 = arith.mulf %92, %93 : vector<8x8xf32>
    %95 = arith.truncf %94 : vector<8x8xf32> to vector<8x8xbf16>
    %c0_53 = arith.constant 0 : index
    %c3 = arith.constant 3 : index
    %c0_54 = arith.constant 0 : index
    %c0_55 = arith.constant 0 : index
    %96 = vector.load %arg7[%c0_53, %c3, %c0_54, %c0_55] : memref<1x4x8x8xbf16, #tpu.memory_space<vmem>>, vector<1x1x8x8xbf16>
    %97 = vector.shape_cast %96 : vector<1x1x8x8xbf16> to vector<8x8xbf16>
    %98 = vector.shape_cast %95 : vector<8x8xbf16> to vector<1x1x8x8xbf16>
    tpu.vector_store %arg7[%c0_53, %c3, %c0_54, %c0_55], %98 {strides = array<i32>} : memref<1x4x8x8xbf16, #tpu.memory_space<vmem>>, vector<1x1x8x8xbf16>,
    %99 = vector.extract_strided_slice %37 {offsets = [0, 56], sizes = [8, 8], strides = [1, 1]} : vector<8x96xf32> to vector<8x8xf32>
    %100 = tpu.transpose %99, [1, 0] : vector<8x8xf32> -> vector<8x8xf32>
    %101 = arith.truncf %100 : vector<8x8xf32> to vector<8x8xbf16>
    %c0_56 = arith.constant 0 : index
    %c3_57 = arith.constant 3 : index
    %c0_58 = arith.constant 0 : index
    %c0_59 = arith.constant 0 : index
    %102 = vector.load %arg8[%c0_56, %c3_57, %c0_58, %c0_59] : memref<1x4x8x8xbf16, #tpu.memory_space<vmem>>, vector<1x1x8x8xbf16>
    %103 = vector.shape_cast %102 : vector<1x1x8x8xbf16> to vector<8x8xbf16>
    %104 = vector.shape_cast %101 : vector<8x8xbf16> to vector<1x1x8x8xbf16>
    tpu.vector_store %arg8[%c0_56, %c3_57, %c0_58, %c0_59], %104 {strides = array<i32>} : memref<1x4x8x8xbf16, #tpu.memory_space<vmem>>, vector<1x1x8x8xbf16>,
    %105 = vector.extract_strided_slice %37 {offsets = [0, 88], sizes = [8, 8], strides = [1, 1]} : vector<8x96xf32> to vector<8x8xf32>
    %106 = arith.truncf %105 : vector<8x8xf32> to vector<8x8xbf16>
    %c0_60 = arith.constant 0 : index
    %c3_61 = arith.constant 3 : index
    %c0_62 = arith.constant 0 : index
    %c0_63 = arith.constant 0 : index
    %107 = vector.load %arg9[%c0_60, %c3_61, %c0_62, %c0_63] : memref<1x4x8x8xbf16, #tpu.memory_space<vmem>>, vector<1x1x8x8xbf16>
    %108 = vector.shape_cast %107 : vector<1x1x8x8xbf16> to vector<8x8xbf16>
    %109 = vector.shape_cast %106 : vector<8x8xbf16> to vector<1x1x8x8xbf16>
    tpu.vector_store %arg9[%c0_60, %c3_61, %c0_62, %c0_63], %109 {strides = array<i32>} : memref<1x4x8x8xbf16, #tpu.memory_space<vmem>>, vector<1x1x8x8xbf16>,
    return
  }
  func.func @transform_0(%arg0: i32, %arg1: i32) -> (i32, i32, i32) {
    %c0_i32 = arith.constant 0 : i32
    %c0_i32_0 = arith.constant 0 : i32
    return %arg0, %arg1, %c0_i32 : i32, i32, i32
  }
  func.func @transform_1(%arg0: i32, %arg1: i32) -> (i32, i32) {
    %c0_i32 = arith.constant 0 : i32
    %c0_i32_0 = arith.constant 0 : i32
    %c0_i32_1 = arith.constant 0 : i32
    return %c0_i32, %c0_i32_0 : i32, i32
  }
  func.func @transform_2(%arg0: i32, %arg1: i32) -> (i32, i32) {
    %c0_i32 = arith.constant 0 : i32
    %c0_i32_0 = arith.constant 0 : i32
    %c0_i32_1 = arith.constant 0 : i32
    return %c0_i32, %c0_i32_0 : i32, i32
  }
  func.func @transform_3(%arg0: i32, %arg1: i32) -> (i32, i32) {
    %c0_i32 = arith.constant 0 : i32
    %c0_i32_0 = arith.constant 0 : i32
    %c0_i32_1 = arith.constant 0 : i32
    return %c0_i32, %c0_i32_0 : i32, i32
  }
  func.func @transform_4(%arg0: i32, %arg1: i32) -> (i32, i32) {
    %c0_i32 = arith.constant 0 : i32
    %c0_i32_0 = arith.constant 0 : i32
    %c0_i32_1 = arith.constant 0 : i32
    return %c0_i32, %c0_i32_0 : i32, i32
  }
  func.func @transform_5(%arg0: i32, %arg1: i32) -> (i32, i32, i32, i32) {
    %c0_i32 = arith.constant 0 : i32
    %c0_i32_0 = arith.constant 0 : i32
    %c0_i32_1 = arith.constant 0 : i32
    return %arg0, %c0_i32, %arg1, %c0_i32_0 : i32, i32, i32, i32
  }
  func.func @transform_6(%arg0: i32, %arg1: i32) -> (i32, i32, i32, i32) {
    %c0_i32 = arith.constant 0 : i32
    %c0_i32_0 = arith.constant 0 : i32
    %c0_i32_1 = arith.constant 0 : i32
    return %arg0, %c0_i32, %c0_i32_0, %arg1 : i32, i32, i32, i32
  }
  func.func @transform_7(%arg0: i32, %arg1: i32) -> (i32, i32, i32, i32) {
    %c0_i32 = arith.constant 0 : i32
    %c0_i32_0 = arith.constant 0 : i32
    %c0_i32_1 = arith.constant 0 : i32
    return %arg0, %c0_i32, %arg1, %c0_i32_0 : i32, i32, i32, i32
  }
}

</mosaic_0001>

<bundles_post_ra>
// kernel: tpu_custom_call.1
= control target key start
LH: loop header
LB: loop body
LE: loop exit
PB: predicated region body
PF: predicated region fallthrough
CT: control target
= control target key end

     0   :  { %s1577_s0 = inlined_call_operand.hbm [shape: f32[2,8,32], index: 0, kind: input, shape index: {}]   ;;  %s1578_s1 = inlined_call_operand.hbm [shape: f32[1,32], index: 1, kind: input, shape index: {}]   ;;  %s1579_s2 = inlined_call_operand.vmem [shape: f32[1,32], index: 2, kind: input, shape index: {}]   ;;  %s1580_s3 = inlined_call_operand.hbm [shape: bf16[32,96], index: 3, kind: input, shape index: {}]   ;;  %s1581_s4 = inlined_call_operand.vmem [shape: f32[1,96], index: 4, kind: input, shape index: {}]   ;;  %s1582_s5 = inlined_call_operand.hbm [shape: bf16[2,4,8,8], index: 5, kind: output, shape index: {0}]   ;;  %s1583_s6 = inlined_call_operand.hbm [shape: bf16[2,4,8,8], index: 6, kind: output, shape index: {1}]   ;;  %s1584_s7 = inlined_call_operand.hbm [shape: bf16[2,4,8,8], index: 7, kind: output, shape index: {2}]  }
   0x1   :  { %1588 = sst [smem:[#allocation16_spill]] %s1577_s0 }
   0x2   :  { %1589 = sst [smem:[#allocation17_spill]] %s1578_s1 }
   0x3   :  { %1590 = sst [smem:[#allocation18_spill]] %s1579_s2 }
   0x4   :  { %1591 = sst [smem:[#allocation19_spill]] %s1580_s3 }
   0x5   :  { %13 = vsyncpa [#allocation3], 0 }
   0x6   :  { %15 = vsyncpa [#allocation3 + $0x1], 0 }
   0x7   :  { %16 = vsyncpa [#allocation6], 0 }
   0x8   :  { %17 = vsyncpa [#allocation4], 0 }
   0x9   :  { %19 = vsyncpa [#allocation4 + $0x1], 0 }
   0xa   :  { %20 = vsyncpa [#allocation10], 0 }
   0xb   :  { %22 = vsyncpa [#allocation10 + $0x1], 0  ;;  %s1331_s24 = smov 0   ;;  %s1333_s25 = smov 0  }
   0xc   :  { %s1335_s26 = smov 0   ;;  %s1337_s27 = smov 0  }
   0xd   :  { %s1339_s28 = smov 0   ;;  %s1341_s29 = smov 0  }
   0xe LB: > { %s1362_s30 = sadd.s32 4294967295, %s1272_s29   ;;  %s1585_s8 = sadd.s32 4294967294, %s1272_s29   ;;  %s1272_s29 = sphi %s1341_s29, %s28_s29   ;;  %s1268_s28 = sphi %s1339_s28, %s1606_s28   ;;  %s1264_s27 = sphi %s1337_s27, %s1605_s27   ;;  %s1260_s26 = sphi %s1335_s26, %s1604_s26   ;;  %s1256_s25 = sphi %s1333_s25, %s1603_s25   ;;  %s1252_s24 = sphi %s1331_s24, %s1602_s24  }
   0xf   : > { %p62_p0 = scmp.ne.s32.totalorder %s1256_s25, %s1252_s24  ;;  %p63_p1 = scmp.eq.s32.totalorder %s1362_s30, 0 }
  0x10   : > { %p178_p2 = scmp.eq.s32.totalorder %s1585_s8, 1  ;;  %p873_p4 = scmp.ge.s32.totalorder %s1272_s29, 1 }
  0x11   : > { %p1372_p3 = por %p63_p1, %p62_p0  ;;  %p241_p6 = scmp.lt.s32.totalorder %s1272_s29, 3 }
  0x12   : > { %p1377_p5 = por %p178_p2, %p62_p0  ;;  %s1594_s1 = sld [smem:[#allocation17_spill]] }
  0x13   : > { %p1385_p7 = pnand %p873_p4, %p241_p6  ;;  %p876_p8 = scmp.ge.s32.totalorder %s1272_s29, 2 }
  0x14   : > { %s1274_s15 = smov [#allocation5]   ;;  %s1596_s3 = sld [smem:[#allocation19_spill]] }
  0x15   : > { %p936_p9 = pneg %p1385_p7  ;;  %s255_s16 = sshll.u32 %s1274_s15, 4  ;;  %s256_s16 = int_to_ptr.vmem [resolvable:$true] %s255_s16 }
  0x16   : > { %s1275_s20 = smov [#allocation7]   ;;  %s1276_s22 = smov 64  }
  0x17   : > { %p937_p10 = pnand %p936_p9, %p63_p1  ;;  %s269_s21 = sshll.u32 %s1275_s20, 4  ;;  %s270_s21 = int_to_ptr.vmem [resolvable:$true] %s269_s21 }
  0x18   : > { %s253_s13 = sshll.u32 %s1594_s1, 4  ;;  %s1277_s23 = smov 4   ;;  %s254_s13 = int_to_ptr.hbm [resolvable:$true] %s253_s13 }
  0x19   : > { %939 = dma.hbm_to_vmem [thread:$0]  (!%p937_p10), %s254_s13, 16, %s256_s16, [#allocation6]  }
  0x1a   : > { %s267_s19 = sshll.u32 %s1596_s3, 4  ;;  %p172_p11 = scmp.eq.s32.totalorder %s1362_s30, 1  ;;  %s268_s19 = int_to_ptr.hbm [resolvable:$true] %s267_s19 }
  0x1b   : > { %942 = dma.hbm_to_vmem [thread:$0]  (!%p937_p10), %s268_s19, 256, %s270_s21, [#allocation6], %s1276_s22, %s1276_s22, %s1277_s23  }
  0x1c   : > { %s40_s11 = sadd.s32 1, %s1268_s28  ;;  %s49_s12 = sadd.s32 1, %s1260_s26 }
  0x1d   : > { %p42_p12 = scmp.ge.s32.totalorder %s40_s11, 2  ;;  %p56_p13 = scmp.ne.s32.totalorder %s1260_s26, %s1256_s25 }
  0x1e   : > { %p57_p0 = scmp.eq.s32.totalorder %s1272_s29, 0  ;;  %p959_p4 = scmp.lt.s32.totalorder %s1272_s29, 2 }
  0x1f   : > { %s1608_s11 = smov (%p42_p12, %s40_s11), 0  ;;  %p1405_p2 = por %p172_p11, %p56_p13 }
  0x20   : > { %s44_s13 = ssub.s32 %s1268_s28, %s1608_s11  ;;  %s286_s16 = sand.u32 1, %s1260_s26  }
  0x21   : > { %p47_p6 = scmp.eq.s32.totalorder %s44_s13, 0  ;;  %p58_p9 = por %p57_p0, %p56_p13 }
  0x22   : > { %s877_s17 = sshll.u32 %s286_s16, 3  ;;  %s878_s18 = sshll.u32 %s1268_s28, 3 }
  0x23   : > { %s1415_s19 = scalar_select %p47_p6, %s1260_s26, %s49_s12  }
  0x24   : > { %s1598_s0 = sld [smem:[#allocation16_spill]]  ;;  %s290_s8 = scalar_lea.vmem [#allocation2], %s877_s17 }
  0x25   : > { %s299_s1 = sshll.u32 %s290_s8, 4  ;;  %p944_p10 = pnand %p959_p4, %p58_p9  ;;  %s300_s1 = int_to_ptr.vmem [resolvable:$true] %s299_s1 }
  0x26   : > { %s287_s3 = scalar_lea.sflag [#allocation3], %s286_s16  ;;  %s1425_s12 = sand.u32 (!%p1385_p7), 1, %s1256_s25  }
  0x27   : > { %s880_s13 = sshll.u32 (!%p1385_p7), %s1425_s12, 3 }
  0x28   : > { %308 = sbr.rel (%p1385_p7) target bundleno = 995 (0x3e3), region = 40  ;;  %s314_s20 = scalar_lea.vmem (!%p1385_p7), [#allocation2], %s880_s13 }
  0x2a   : > { %s295_s22 = scalar_lea.hbm %s1598_s0, %s878_s18  ;;  %s311_s18 = scalar_lea.sflag (!%p1385_p7), [#allocation3], %s1425_s12 }
  0x2b   : > { %s297_s23 = sshll.u32 %s295_s22, 4  ;;  %s298_s23 = int_to_ptr.hbm [resolvable:$true] %s297_s23 }
  0x2c   : > { %946 = dma.hbm_to_vmem [thread:$0]  (!%p944_p10), %s298_s23, 128, %s300_s1, %s287_s3  }
  0x2d   : > { %1235 = dma.done.wait (%p1372_p3), %s311_s18, 128  }
  0x2e   : > { %1237 = vsyncadd (%p1372_p3), %s311_s18, 4294967168 }
  0x2f   : > { %1239 = dma.done.wait (%p63_p1), [#allocation6], 272  }
  0x30   : > { %1241 = vsyncadd (%p63_p1), [#allocation6], 4294967024  ;;  %vm370_vm0 = vcmask 261120   ;;  %v367_v0 = vld [vmem:[%s314_s20] sm:$0xff]  ;;  %v1278_v2 = vmov 32.0   ;;  %v915_v15 = vld [vmem:[#allocation7] sm:$0xff] }
  0x31   : > { %v371_v1 = vsel %vm370_vm0, %v367_v0, 0.0  ;;  %1032 = vrcp.f32 %v1278_v2  ;;  %v916_v14 = vld [vmem:[#allocation7 + $0x8] sm:$0xff]  ;;  %v1029_v25 = vld [vmem:[#allocation5] ss:$0 sm:$0xff]  ;;  %s1599_s2 = sld [smem:[#allocation18_spill]]  ;;  %s1447_s14 = sshll.u32 %s1425_s12, 4 }
  0x32   : > { %372 = vadd.xlane.f32.xlu0 %v371_v1  ;;  %438 = vmatpush.bf16.msra.mxu0 %v916_v14  ;;  %v1031_v32 = vld [vmem:[%s1581_s4] ss:$0 sm:$0xff]  ;;  %s1279_s16 = smov 88   ;;  %s1280_s17 = smov 96   ;;  %vm447_vm5 = vcmask 60416  }
  0x33   : > { %s1586_s21 = smov 64   ;;  %s1454_s22 = scalar_lea.vmem [#allocation8], %s1447_s14 }
  0x34   : > { %s1282_s23 = smov 80   ;;  %s1283_s13 = smov 120  }
  0x35   : > { %s1284_s18 = smov 56   ;;  %s1285_s20 = smov 48  }
  0x36   : > { %439 = vmatpush.bf16.msra.mxu0 %v915_v15  ;;  %s1286_s1 = smov 112   ;;  %s1461_s3 = scalar_lea.vmem [#allocation11], %s1447_s14 }
  0x37   : > { %v1033_v3 = vpop.eup %1032  ;;  %v1030_v28 = vld [vmem:[%s1599_s2] ss:$0 sm:$0xff]  ;;  %s1287_s8 = smov 72   ;;  %s1288_s9 = smov 104  }
  0x38   : > { %v375_v4 = vmul.f32 32.0, %v1033_v3  ;;  %vm379_vm1 = vweird.f32 %v1033_v3 }
  0x3a   : > { %v376_v5 = vsub.f32 1.0, %v375_v4 }
  0x3c   : > { %v377_v6 = vmul.f32 %v1033_v3, %v376_v5 }
  0x3e   : > { %v378_v7 = vadd.f32 %v1033_v3, %v377_v6 }
  0x40   : > { %v380_v8 = vsel %vm379_vm1, %v1033_v3, %v378_v7 }
  0xa5   : > { %v373_v9 = vpop.xlane.xlu0 %372 }
  0xa6   : > { %v381_v10 = vmul.f32 %v380_v8, %v373_v9 }
  0xa8   : > { %v382_v11 = vsub.f32 %v367_v0, %v381_v10 }
  0xaa   : > { %v383_v12 = vmul.f32 %v382_v11, %v382_v11 }
  0xac   : > { %v384_v13 = vsel %vm370_vm0, %v383_v12, 0.0 }
  0xad   : > { %385 = vadd.xlane.f32.xlu0 %v384_v13 }
 0x120   : > { %v386_v16 = vpop.xlane.xlu0 %385 }
 0x121   : > { %v387_v17 = vmul.f32 %v386_v16, %v380_v8 }
 0x123   : > { %v388_v18 = vadd.f32 1e-05, %v387_v17 }
 0x125   : > { %1034 = vrsqrt.f32 %v388_v18  ;;  %vm395_vm3 = vweird.f32 %v388_v18 }
 0x12b   : > { %v1035_v19 = vpop.eup %1034 }
 0x12c   : > { %v390_v20 = vmul.f32 %v1035_v19, %v388_v18  ;;  %vm396_vm2 = vweird.f32 %v1035_v19 }
 0x12d   : > { %vm397_vm4 = vmor %vm395_vm3, %vm396_vm2 }
 0x12e   : > { %v391_v21 = vmul.f32 %v1035_v19, %v390_v20 }
 0x130   : > { %v392_v22 = vmul.f32 0.5, %v391_v21 }
 0x132   : > { %v393_v23 = vsub.f32 1.5, %v392_v22 }
 0x134   : > { %v394_v24 = vmul.f32 %v1035_v19, %v393_v23 }
 0x136   : > { %v398_v26 = vsel %vm397_vm4, %v1035_v19, %v394_v24 }
 0x137   : > { %v399_v27 = vmul.f32 %v398_v26, %v382_v11 }
 0x139   : > { %v403_v29 = vmul.f32 %v1029_v25, %v399_v27 }
 0x13b   : > { %v407_v30 = vadd.f32 %v1030_v28, %v403_v29 }
 0x13d   : > { %v408_v31 = vpack.c.bf16 %v407_v30, %v407_v30 }
 0x13f   : > { %894 = vmatmul.msk.bf16.vlgmr.msra.gmra.mxu0 %vm370_vm0, %v408_v31 }
 0x1bc   : > { %v441_v33 = vpop.f32.mrf.mxu0 }
 0x1bd   : > { %v442_v34 = vadd.f32 %v1031_v32, %v441_v33 }
 0x1bf   : > { %499 = vrot.lane.b32.xlu0 %v442_v34, %s1279_s16  ;;  %450 = vrot.lane.b32.xlu1 %v442_v34, %s1280_s17  ;;  %v1449_v35 = vpack.c.bf16 %v442_v34, %v442_v34  ;;  %v445_v36 = vmul.f32 0.35355338, %v442_v34  ;;  %s1474_s16 = scalar_lea.vmem [#allocation9], %s1447_s14  ;;  %s662_s14 = sshll.u32 %s1454_s22, 4  ;;  %s663_s14 = int_to_ptr.vmem [resolvable:$true] %s662_s14 }
 0x1c0   : > { %s1486_s17 = sshll.u32 %s1264_s27, 4  ;;  %s1146_s27 = scalar_lea.hbm %s1582_s5, 32 }
 0x1c1   : > { %489 = vrot.lane.b32.xlu2 %v1449_v35, %s1586_s21  ;;  %v446_v37 = vpack.c.bf16 %v445_v36, %v445_v36 }
 0x1c3   : > { %448 = vst.msk [vmem:[%s1454_s22] sm:$0xf] %vm447_vm5, %v446_v37 }
 0x1c4   : > { %v443_v38 = vpop.f32.mrf.mxu0 }
 0x1c7   : > { %547 = vrot.lane.b32.xlu0 %v442_v34, %s1282_s23 }
 0x1c9   : > { %494 = vrot.lane.b32.xlu2 %v446_v37, %s1283_s13 }
 0x1cf   : > { %537 = vrot.lane.b32.xlu0 %v1449_v35, %s1284_s18  ;;  %s661_s18 = scalar_lea.hbm %s1582_s5, %s1486_s17 }
 0x1d7   : > { %585 = vrot.lane.b32.xlu0 %v1449_v35, %s1285_s20  ;;  %s664_s20 = sshll.u32 %s661_s18, 4  ;;  %s665_s20 = int_to_ptr.hbm [resolvable:$true] %s664_s20 }
 0x1df   : > { %542 = vrot.lane.b32.xlu0 %v446_v37, %s1286_s1  ;;  %s639_s1 = scalar_lea.sflag [#allocation4], %s1425_s12 }
 0x21b   : > { %v490_v39 = vpop.permute.xlu2 %489 }
 0x21c   : > { %492 = vst.msk [vmem:[%s1461_s3] sm:$0xf] %vm447_vm5, %v490_v39 }
 0x223   : > { %v495_v40 = vpop.permute.xlu2 %494 }
 0x224   : > { %895 = vst.msk [vmem:[%s1454_s22 + $0x4] sm:$0xf] %vm447_vm5, %v495_v40 }
 0x231   : > { %v500_v41 = vpop.permute.xlu0 %499  ;;  %v451_v42 = vpop.permute.xlu1 %450 }
 0x232   : > { %453 = vxpose.xlu1.b32.start.end [1/1] (short) (narrow) %v451_v42, 8  ;;  %502 = vxpose.xlu2.b32.start.end [1/1] (short) (narrow) %v500_v41, 8 }
 0x239   : > { %v548_v43 = vpop.permute.xlu0 %547 }
 0x23a   : > { %550 = vxpose.xlu2.b32.start.end [1/1] (short) (narrow) %v548_v43, 8 }
 0x241   : > { %v538_v44 = vpop.permute.xlu0 %537 }
 0x242   : > { %897 = vst.msk [vmem:[%s1461_s3 + $0x4] sm:$0xf] %vm447_vm5, %v538_v44 }
 0x249   : > { %v586_v45 = vpop.permute.xlu0 %585 }
 0x24a   : > { %900 = vst.msk [vmem:[%s1461_s3 + $0x8] sm:$0xf] %vm447_vm5, %v586_v45 }
 0x251   : > { %v543_v46 = vpop.permute.xlu0 %542 }
 0x252   : > { %898 = vst.msk [vmem:[%s1454_s22 + $0x8] sm:$0xf] %vm447_vm5, %v543_v46 }
 0x28c   : > { %595 = vrot.lane.b32.xlu1 %v442_v34, %s1287_s8  ;;  %s1140_s8 = sshra.s32 %s665_s20, 4  ;;  %s1141_s8 = int_to_ptr.hbm [resolvable:$true] %s1140_s8 }
 0x28d   : > { %p1147_p11 = scmp.lt.s32.totalorder %s1141_s8, %s1582_s5 }
 0x2a3   : > { %590 = vrot.lane.b32.xlu2 %v446_v37, %s1288_s9  ;;  %s1142_s9 = scalar_lea.hbm %s1141_s8, 16 }
 0x2a4   : > { %p1143_p1 = scmp.ne.s32.totalorder %s1141_s8, %s1142_s9  ;;  %p1148_p12 = scmp.lt.s32.totalorder %s1146_s27, %s1142_s9 }
 0x2a6   : > { %p1144_p3 = pnand %p1143_p1, %p1405_p2  ;;  %p1149_p13 = por %p1148_p12, %p1147_p11 }
 0x2a8   : > { %p1145_p7 = pneg %p1144_p3 }
 0x2aa   : > { %p1150_p0 = pnand %p1149_p13, %p1145_p7 }
 0x2cb   : > { %v518_v47 = vpop.trf.xlu2 }
 0x2cc   : > { %v534_v48 = vpack.c.bf16 %v518_v47, %v518_v47 }
 0x2ce   : > { %896 = vst.msk [vmem:[%s1474_s16 + $0x4] sm:$0xf] %vm447_vm5, %v534_v48 }
 0x2d3   : > { %v566_v49 = vpop.trf.xlu2 }
 0x2d4   : > { %v582_v50 = vpack.c.bf16 %v566_v49, %v566_v49 }
 0x2d6   : > { %899 = vst.msk [vmem:[%s1474_s16 + $0x8] sm:$0xf] %vm447_vm5, %v582_v50  ;;  %v469_v51 = vpop.trf.xlu1 }
 0x2d7   : > { %v485_v52 = vpack.c.bf16 %v469_v51, %v469_v51 }
 0x2d9   : > { %486 = vst.msk [vmem:[%s1474_s16] sm:$0xf] %vm447_vm5, %v485_v52 }
 0x2fd   : > { %v591_v53 = vpop.permute.xlu2 %590 }
 0x2fe   : > { %901 = vst.msk [vmem:[%s1454_s22 + $0xc] sm:$0xf] %vm447_vm5, %v591_v53  ;;  %v596_v54 = vpop.permute.xlu1 %595 }
 0x2ff   : > { %598 = vxpose.xlu0.b32.start.end [1/1] (short) (narrow) %v596_v54, 8 }
 0x300   : > { %1153 = shalt.err (!%p1150_p0)
}
 0x301   : > { %s1289_s12 = smov 4   ;;  %s1600_s23 = smov 64  }
 0x302   : > { %930 = dma.vmem_to_hbm [thread:$0]  (%p1405_p2), %s663_s14, 256, %s665_s20, %s639_s1, %s1600_s23, %s1600_s23, %s1289_s12  }
 0x303   : > { %s1290_s21 = smov 40   ;;  %s679_s13 = scalar_lea.hbm %s1583_s6, %s1486_s17 }
 0x304   : > { %s680_s18 = sshll.u32 %s1474_s16, 4  ;;  %s643_s8 = sand.u32 1, %s1362_s30   ;;  %s681_s18 = int_to_ptr.vmem [resolvable:$true] %s680_s18 }
 0x305   : > { %s682_s9 = sshll.u32 %s679_s13, 4  ;;  %s1515_s22 = scalar_lea.sflag [#allocation10], %s643_s8  ;;  %s683_s9 = int_to_ptr.hbm [resolvable:$true] %s682_s9 }
 0x306   : > { %s1168_s14 = sshra.s32 %s683_s9, 4  ;;  %s1174_s30 = scalar_lea.hbm %s1583_s6, 32  ;;  %s1169_s14 = int_to_ptr.hbm [resolvable:$true] %s1168_s14 }
 0x307   : > { %s1170_s20 = scalar_lea.hbm %s1169_s14, 16  ;;  %p1175_p10 = scmp.lt.s32.totalorder %s1169_s14, %s1583_s6 }
 0x308   : > { %p1171_p4 = scmp.ne.s32.totalorder %s1169_s14, %s1170_s20  ;;  %p1176_p1 = scmp.lt.s32.totalorder %s1174_s30, %s1170_s20 }
 0x30a   : > { %p1172_p6 = pnand %p1171_p4, %p1405_p2  ;;  %p1177_p3 = por %p1176_p1, %p1175_p10 }
 0x30c   : > { %p1173_p9 = pneg %p1172_p6 }
 0x30e   : > { %p1178_p7 = pnand %p1177_p3, %p1173_p9 }
 0x36d   : > { %633 = vrot.lane.b32.xlu0 %v1449_v35, %s1290_s21 }
 0x3a3   : > { %v614_v55 = vpop.trf.xlu0 }
 0x3a4   : > { %v630_v56 = vpack.c.bf16 %v614_v55, %v614_v55 }
 0x3a6   : > { %902 = vst.msk [vmem:[%s1474_s16 + $0xc] sm:$0xf] %vm447_vm5, %v630_v56 }
 0x3a7   : > { %1181 = shalt.err (!%p1178_p7)
}
 0x3a8   : > { %931 = dma.vmem_to_hbm [thread:$0]  (%p1405_p2), %s681_s18, 256, %s683_s9, %s1515_s22, %s1600_s23, %s1600_s23, %s1289_s12  }
 0x3a9   : > { %s697_s13 = scalar_lea.hbm %s1584_s7, %s1486_s17  ;;  %s698_s8 = sshll.u32 %s1461_s3, 4  ;;  %s699_s8 = int_to_ptr.vmem [resolvable:$true] %s698_s8 }
 0x3aa   : > { %s700_s14 = sshll.u32 %s697_s13, 4  ;;  %s1202_s9 = scalar_lea.hbm %s1584_s7, 32  ;;  %s701_s14 = int_to_ptr.hbm [resolvable:$true] %s700_s14 }
 0x3ab   : > { %s1196_s20 = sshra.s32 %s701_s14, 4  ;;  %s1197_s20 = int_to_ptr.hbm [resolvable:$true] %s1196_s20 }
 0x3ac   : > { %s1198_s1 = scalar_lea.hbm %s1197_s20, 16  ;;  %p1203_p0 = scmp.lt.s32.totalorder %s1197_s20, %s1584_s7 }
 0x3ad   : > { %p1199_p11 = scmp.ne.s32.totalorder %s1197_s20, %s1198_s1  ;;  %p1204_p4 = scmp.lt.s32.totalorder %s1202_s9, %s1198_s1 }
 0x3af   : > { %p1200_p12 = pnand %p1199_p11, %p1405_p2  ;;  %p1205_p6 = por %p1204_p4, %p1203_p0 }
 0x3b1   : > { %p1201_p13 = pneg %p1200_p12 }
 0x3b3   : > { %p1206_p9 = pnand %p1205_p6, %p1201_p13 }
 0x3df   : > { %v634_v57 = vpop.permute.xlu0 %633 }
 0x3e0   : > { %903 = vst.msk [vmem:[%s1461_s3 + $0xc] sm:$0xf] %vm447_vm5, %v634_v57 }
 0x3e1   : > { %1209 = shalt.err (!%p1206_p9)
}
 0x3e2   : > { %932 = dma.vmem_to_hbm [thread:$0]  (%p1405_p2), %s699_s8, 256, %s701_s14, %s1515_s22, %s1600_s23, %s1600_s23, %s1289_s12  }
 0x3e3 PF: > { %s715_s3 = sand.u32 1, %s1252_s24   ;;  %p948_p10 = pnand %p876_p8, %p1377_p5 }
 0x3e4   : > { %s716_s21 = scalar_lea.sflag [#allocation4], %s715_s3 }
 0x3e5   : > { %p949_p1 = pneg %p948_p10 }
 0x3e7   : > { %1243 = dma.done.wait (%p949_p1), %s716_s21, 256  }
 0x3e8   : > { %1245 = vsyncadd (%p949_p1), %s716_s21, 4294967040  ;;  %s1601_s0 = sadd.s32 4294967294, %s1272_s29  }
 0x3e9   : > { %s725_s15 = sand.u32 1, %s1601_s0  }
 0x3ea   : > { %s726_s16 = scalar_lea.sflag [#allocation10], %s725_s15 }
 0x3eb   : > { %1247 = dma.done.wait (%p949_p1), %s726_s16, 512  }
 0x3ec   : > { %1249 = vsyncadd (%p949_p1), %s726_s16, 4294966784  ;;  %s28_s29 = sadd.s32 1, %s1272_s29   ;;  %s1602_s24 = smov %s1256_s25 }
 0x3ed   : > { %p25_p2 = scmp.ge.s32.totalorder %s28_s29, 4   ;;  %s1603_s25 = smov %s1260_s26 }
 0x3ee   : > { %s1604_s26 = smov %s1415_s19  ;;  %s1605_s27 = smov %s1268_s28 }
 0x3ef   : > { %s1606_s28 = smov %s1608_s11  ;;  %27 = sbr.rel (!%p25_p2) target bundleno = 14 (0xe), region = 134 }
 0x3f4   :  { %742 = vsyncpa [#allocation3], 1 }
 0x3f5   :  { %744 = vsyncpa [#allocation3 + $0x1], 1 }
 0x3f6   :  { %745 = vsyncpa [#allocation6], 1 }
 0x3f7   :  { %746 = vsyncpa [#allocation4], 1 }
 0x3f8   :  { %748 = vsyncpa [#allocation4 + $0x1], 1 }
 0x3f9   :  { %749 = vsyncpa [#allocation10], 1 }
 0x3fa   :  { %751 = vsyncpa [#allocation10 + $0x1], 1 }

</bundles_post_ra>
